<compile_context>
chip_gen: v6e
topology: v6e:2x2x1
jax: 0.10.0
libtpu: 0.0.40
codegen_flags: <defaults>
</compile_context>

<pallas_src>
import math

import jax
import jax.numpy as jnp
from jax.experimental import pallas as pl
from jax.experimental.pallas import tpu as pltpu

# ---------------- config (small, consistent with the module) ----------------
B = 2          # batch
T = 8          # sequence length
C = 32         # n_embd
H = 4          # n_heads
D = C // H     # head dim


def _mhsa_kernel(x_ref, bias_ref, wqkv_ref, bqkv_ref, o_ref):
    """Single grid step over the whole (tiny) problem.

    x_ref    : (B*T, C)    bf16  flattened activations
    bias_ref : (B*T, B*T)  f32   additive bias: 0 keep / -1e30 for masked keys
                                 OR cross-batch-element pairs
    wqkv_ref : (C, 3C)     bf16  fused [Wq | Wk | Wv], (in, out) layout
    bqkv_ref : (1, 3C)     f32   fused [bq | bk | bv]
    o_ref    : (B*T, C)    f32   merged-heads output
    """
    # One fused bf16 MXU pass for Q/K/V of every row in the batch; f32 acc.
    qkv = jnp.dot(x_ref[...], wqkv_ref[...],
                  preferred_element_type=jnp.float32) + bqkv_ref[...]    # (BT, 3C)

    # Fold the 1/sqrt(D) scale into Q once.
    scale = 1.0 / math.sqrt(D)
    q_all = qkv[:, 0:C] * scale                                          # (BT, C) f32
    k_all = qkv[:, C:2 * C]                                              # (BT, C) f32
    v_all = qkv[:, 2 * C:3 * C]                                          # (BT, C) f32

    # Head-major stacks (H, B*T, D): H static lane slices + one leading-axis
    # stack per tensor (instead of B*H per-head slices / matmuls / softmaxes).
    def split_heads(t):
        return jnp.stack([t[:, h * D:(h + 1) * D] for h in range(H)], axis=0)

    qh = split_heads(q_all)                                              # (H, BT, D) f32
    kh = split_heads(k_all)                                              # (H, BT, D) f32
    vh = split_heads(v_all).astype(jnp.bfloat16)                         # (H, BT, D) bf16

    # ONE batched score matmul across all heads.  Rows span the whole batch;
    # bias_ref kills cross-batch pairs and masked keys (additive -1e30).
    s = jnp.einsum("hqd,hkd->hqk", qh, kh,
                   preferred_element_type=jnp.float32)                   # (H, BT, BT)
    s = s + bias_ref[...][None, :, :]

    # ONE numerically-stable softmax over keys (masked entries -> exp == 0).
    s = s - jnp.max(s, axis=-1, keepdims=True)
    e = jnp.exp(s)
    p = e / jnp.sum(e, axis=-1, keepdims=True)

    # TODO(synk): attention dropout (nn.Dropout) — identity in eval mode.

    # ONE batched PV matmul (bf16 operands, f32 accumulation).
    y = jnp.einsum("hqk,hkd->hqd", p.astype(jnp.bfloat16), vh,
                   preferred_element_type=jnp.float32)                   # (H, BT, D)

    # Merge heads back to (B*T, C) and store ONCE.
    o_ref[...] = jnp.concatenate([y[h] for h in range(H)],
                                 axis=-1).astype(o_ref.dtype)


def multi_headed_self_attention(x, mask, params):
    """x: (B, T, C) f32, mask: (B, T) f32 (1 = keep key position, 0 = masked)."""
    if mask is None:
        mask = jnp.ones((B, T), dtype=jnp.float32)

    # Fuse projection params: one (C, 3C) weight and one (1, 3C) bias.
    # bf16 weights/activations -> native MXU path + half the input DMA bytes.
    wqkv = jnp.concatenate(
        [params["wq"], params["wk"], params["wv"]], axis=1).astype(jnp.bfloat16)
    bqkv = jnp.concatenate(
        [params["bq"], params["bk"], params["bv"]], axis=1).astype(jnp.float32)

    # Combined additive bias (B*T, B*T): 0 where (same batch element AND key
    # kept), -1e30 otherwise.  Finite negative instead of -inf avoids NaN for a
    # fully-masked row (documented divergence from PyTorch's -inf semantics).
    row_batch = jnp.arange(B * T, dtype=jnp.int32) // T
    same_batch = row_batch[:, None] == row_batch[None, :]
    key_keep = (mask.reshape(B * T) > 0.0)[None, :]
    attn_bias = jnp.where(same_batch & key_keep, 0.0, -1e30).astype(jnp.float32)

    # Flatten batch*seq so the QKV projection is one matmul over all rows.
    x_flat = x.reshape(B * T, C).astype(jnp.bfloat16)

    out_flat = pl.pallas_call(
        _mhsa_kernel,
        out_shape=jax.ShapeDtypeStruct((B * T, C), jnp.float32),
        grid_spec=pltpu.PrefetchScalarGridSpec(
            num_scalar_prefetch=0,
            grid=(1,),                       # single step: no per-step overhead
            in_specs=[
                pl.BlockSpec((B * T, C), lambda i: (0, 0)),        # x (flattened)
                pl.BlockSpec((B * T, B * T), lambda i: (0, 0)),    # additive attn bias
                pl.BlockSpec((C, 3 * C), lambda i: (0, 0)),        # fused Wqkv
                pl.BlockSpec((1, 3 * C), lambda i: (0, 0)),        # fused bqkv
            ],
            out_specs=pl.BlockSpec((B * T, C), lambda i: (0, 0)),
        ),
        # NOTE(v7x): at production sizes add a leading batch/query-tile grid
        # axis marked "parallel" so Mosaic can shard across the 2 TensorCores;
        # at B=2/T=8 extra grid steps would only add ~0.35us/step overhead.
        compiler_params=pltpu.CompilerParams(
            dimension_semantics=("arbitrary",)),
    )(x_flat, attn_bias, wqkv, bqkv)

    return out_flat.reshape(B, T, C).astype(x.dtype)


def _reference(x, mask, params):
    """Pure-JAX reference mirroring the PyTorch forward (eval mode)."""
    q = x @ params["wq"] + params["bq"][0]
    k = x @ params["wk"] + params["bk"][0]
    v = x @ params["wv"] + params["bv"][0]

    def split(t):  # (B, T, C) -> (B, H, T, D)
        return t.reshape(B, T, H, D).transpose(0, 2, 1, 3)

    qh, kh, vh = split(q), split(k), split(v)
    attn = jnp.einsum("bhqd,bhkd->bhqk", qh, kh) / math.sqrt(D)
    attn = jnp.where(mask[:, None, None, :] > 0.0, attn, -1e30)
    attn = jax.nn.softmax(attn, axis=-1)
    y = jnp.einsum("bhqk,bhkd->bhqd", attn, vh)
    return y.transpose(0, 2, 1, 3).reshape(B, T, C)


if __name__ == "__main__":
    key = jax.random.PRNGKey(0)
    kx, kq, kk, kv, kbq, kbk, kbv = jax.random.split(key, 7)

    x = jax.random.normal(kx, (B, T, C), dtype=jnp.float32)

    # Mask out the last 2 key positions of batch element 1.
    mask = jnp.ones((B, T), dtype=jnp.float32)
    mask = mask.at[1, -2:].set(0.0)

    # Deterministic parameter init. PyTorch Linear stores (out, in); we keep the
    # transposed (in, out) layout so the kernel does x @ W directly.
    scale = 1.0 / math.sqrt(C)
    params = {
        "wq": jax.random.normal(kq, (C, C), dtype=jnp.float32) * scale,
        "wk": jax.random.normal(kk, (C, C), dtype=jnp.float32) * scale,
        "wv": jax.random.normal(kv, (C, C), dtype=jnp.float32) * scale,
        "bq": jax.random.normal(kbq, (1, C), dtype=jnp.float32) * 0.01,
        "bk": jax.random.normal(kbk, (1, C), dtype=jnp.float32) * 0.01,
        "bv": jax.random.normal(kbv, (1, C), dtype=jnp.float32) * 0.01,
    }

    out = multi_headed_self_attention(x, mask, params)
    out = jax.block_until_ready(out)

    ref = _reference(x, mask, params)
    assert out.shape == (B, T, C)
    # Tolerance reflects bf16 matmul operands (f32 accumulation) in the kernel.
    assert jnp.allclose(out, ref, atol=3e-2, rtol=3e-2), "mismatch vs. JAX reference"

    print("KERNEL_OK")
</pallas_src>

<mosaic_0001>
module attributes {stable_mosaic.version = 11 : i64} {
  func.func @_mhsa_kernel(%arg0: i32, %arg1: memref<16x32xbf16, #tpu.memory_space<vmem>>, %arg2: memref<16x16xf32, #tpu.memory_space<vmem>>, %arg3: memref<32x96xbf16, #tpu.memory_space<vmem>>, %arg4: memref<1x96xf32, #tpu.memory_space<vmem>>, %arg5: memref<16x32xf32, #tpu.memory_space<vmem>>) attributes {dimension_semantics = [#tpu.dimension_semantics<arbitrary>], iteration_bounds = array<i64: 1>, scalar_prefetch = 0 : i64, scratch_operands = 0 : i64, tpu.core_type = #tpu.core_type<tc>, window_params = [{pipeline_mode = #tpu.pipeline_mode<synchronous>, transform_indices = @transform_0, window_bounds = array<i64: 16, 32>}, {pipeline_mode = #tpu.pipeline_mode<synchronous>, transform_indices = @transform_1, window_bounds = array<i64: 16, 16>}, {pipeline_mode = #tpu.pipeline_mode<synchronous>, transform_indices = @transform_2, window_bounds = array<i64: 32, 96>}, {pipeline_mode = #tpu.pipeline_mode<synchronous>, transform_indices = @transform_3, window_bounds = array<i64: 1, 96>}, {pipeline_mode = #tpu.pipeline_mode<synchronous>, transform_indices = @transform_4, window_bounds = array<i64: 16, 32>}]} {
    %c0 = arith.constant 0 : index
    %c0_0 = arith.constant 0 : index
    %0 = vector.load %arg1[%c0, %c0_0] : memref<16x32xbf16, #tpu.memory_space<vmem>>, vector<16x32xbf16>
    %c0_1 = arith.constant 0 : index
    %c0_2 = arith.constant 0 : index
    %1 = vector.load %arg3[%c0_1, %c0_2] : memref<32x96xbf16, #tpu.memory_space<vmem>>, vector<32x96xbf16>
    %cst = arith.constant dense<0.000000e+00> : vector<16x96xf32>
    %2 = tpu.matmul %0, %1, %cst {dimension_numbers = #tpu.dot_dimension_numbers<[1], [0], [0], [1], [0, 0, 1, 1], [], []>} : vector<16x32xbf16>, vector<32x96xbf16>, vector<16x96xf32> -> vector<16x96xf32>
    %c0_3 = arith.constant 0 : index
    %c0_4 = arith.constant 0 : index
    %3 = vector.load %arg4[%c0_3, %c0_4] : memref<1x96xf32, #tpu.memory_space<vmem>>, vector<1x96xf32>
    %4 = vector.broadcast %3 : vector<1x96xf32> to vector<16x96xf32>
    %5 = arith.addf %2, %4 : vector<16x96xf32>
    %6 = vector.extract_strided_slice %5 {offsets = [0, 0], sizes = [16, 32], strides = [1, 1]} : vector<16x96xf32> to vector<16x32xf32>
    %cst_5 = arith.constant 0.353553385 : f32
    %7 = vector.broadcast %cst_5 : f32 to vector<16x32xf32>
    %8 = arith.mulf %6, %7 : vector<16x32xf32>
    %9 = vector.extract_strided_slice %5 {offsets = [0, 32], sizes = [16, 32], strides = [1, 1]} : vector<16x96xf32> to vector<16x32xf32>
    %10 = vector.extract_strided_slice %5 {offsets = [0, 64], sizes = [16, 32], strides = [1, 1]} : vector<16x96xf32> to vector<16x32xf32>
    %11 = vector.extract_strided_slice %8 {offsets = [0, 0], sizes = [16, 8], strides = [1, 1]} : vector<16x32xf32> to vector<16x8xf32>
    %12 = vector.extract_strided_slice %8 {offsets = [0, 8], sizes = [16, 8], strides = [1, 1]} : vector<16x32xf32> to vector<16x8xf32>
    %13 = vector.extract_strided_slice %8 {offsets = [0, 16], sizes = [16, 8], strides = [1, 1]} : vector<16x32xf32> to vector<16x8xf32>
    %14 = vector.extract_strided_slice %8 {offsets = [0, 24], sizes = [16, 8], strides = [1, 1]} : vector<16x32xf32> to vector<16x8xf32>
    %15 = vector.shape_cast %11 : vector<16x8xf32> to vector<1x16x8xf32>
    %16 = vector.shape_cast %12 : vector<16x8xf32> to vector<1x16x8xf32>
    %17 = vector.shape_cast %13 : vector<16x8xf32> to vector<1x16x8xf32>
    %18 = vector.shape_cast %14 : vector<16x8xf32> to vector<1x16x8xf32>
    %19 = tpu.concatenate %15, %16, %17, %18 in 0 : vector<1x16x8xf32>, vector<1x16x8xf32>, vector<1x16x8xf32>, vector<1x16x8xf32> -> vector<4x16x8xf32>
    %20 = vector.extract_strided_slice %9 {offsets = [0, 0], sizes = [16, 8], strides = [1, 1]} : vector<16x32xf32> to vector<16x8xf32>
    %21 = vector.extract_strided_slice %9 {offsets = [0, 8], sizes = [16, 8], strides = [1, 1]} : vector<16x32xf32> to vector<16x8xf32>
    %22 = vector.extract_strided_slice %9 {offsets = [0, 16], sizes = [16, 8], strides = [1, 1]} : vector<16x32xf32> to vector<16x8xf32>
    %23 = vector.extract_strided_slice %9 {offsets = [0, 24], sizes = [16, 8], strides = [1, 1]} : vector<16x32xf32> to vector<16x8xf32>
    %24 = vector.shape_cast %20 : vector<16x8xf32> to vector<1x16x8xf32>
    %25 = vector.shape_cast %21 : vector<16x8xf32> to vector<1x16x8xf32>
    %26 = vector.shape_cast %22 : vector<16x8xf32> to vector<1x16x8xf32>
    %27 = vector.shape_cast %23 : vector<16x8xf32> to vector<1x16x8xf32>
    %28 = tpu.concatenate %24, %25, %26, %27 in 0 : vector<1x16x8xf32>, vector<1x16x8xf32>, vector<1x16x8xf32>, vector<1x16x8xf32> -> vector<4x16x8xf32>
    %29 = vector.extract_strided_slice %10 {offsets = [0, 0], sizes = [16, 8], strides = [1, 1]} : vector<16x32xf32> to vector<16x8xf32>
    %30 = vector.extract_strided_slice %10 {offsets = [0, 8], sizes = [16, 8], strides = [1, 1]} : vector<16x32xf32> to vector<16x8xf32>
    %31 = vector.extract_strided_slice %10 {offsets = [0, 16], sizes = [16, 8], strides = [1, 1]} : vector<16x32xf32> to vector<16x8xf32>
    %32 = vector.extract_strided_slice %10 {offsets = [0, 24], sizes = [16, 8], strides = [1, 1]} : vector<16x32xf32> to vector<16x8xf32>
    %33 = vector.shape_cast %29 : vector<16x8xf32> to vector<1x16x8xf32>
    %34 = vector.shape_cast %30 : vector<16x8xf32> to vector<1x16x8xf32>
    %35 = vector.shape_cast %31 : vector<16x8xf32> to vector<1x16x8xf32>
    %36 = vector.shape_cast %32 : vector<16x8xf32> to vector<1x16x8xf32>
    %37 = tpu.concatenate %33, %34, %35, %36 in 0 : vector<1x16x8xf32>, vector<1x16x8xf32>, vector<1x16x8xf32>, vector<1x16x8xf32> -> vector<4x16x8xf32>
    %38 = arith.truncf %37 : vector<4x16x8xf32> to vector<4x16x8xbf16>
    "tpu.trace_start"() <{level = 10 : i32, message = "hqd,hkd->hqk"}> : () -> ()
    %cst_6 = arith.constant dense<0.000000e+00> : vector<4x16x16xf32>
    %39 = tpu.matmul %19, %28, %cst_6 {dimension_numbers = #tpu.dot_dimension_numbers<[2], [2], [1], [1], [0, 0, 0, 1, 1, 1], [0], [0]>} : vector<4x16x8xf32>, vector<4x16x8xf32>, vector<4x16x16xf32> -> vector<4x16x16xf32>
    "tpu.trace_stop"() : () -> ()
    %c0_7 = arith.constant 0 : index
    %c0_8 = arith.constant 0 : index
    %40 = vector.load %arg2[%c0_7, %c0_8] : memref<16x16xf32, #tpu.memory_space<vmem>>, vector<16x16xf32>
    %41 = vector.shape_cast %40 : vector<16x16xf32> to vector<1x16x16xf32>
    %42 = vector.broadcast %41 : vector<1x16x16xf32> to vector<4x16x16xf32>
    %43 = arith.addf %39, %42 : vector<4x16x16xf32>
    %cst_9 = arith.constant dense<0xFF800000> : vector<4x16xf32>
    %44 = vector.multi_reduction <maximumf>, %43, %cst_9 [2] : vector<4x16x16xf32> to vector<4x16xf32>
    %45 = vector.shape_cast %44 : vector<4x16xf32> to vector<4x16x1xf32>
    %46 = vector.broadcast %45 : vector<4x16x1xf32> to vector<4x16x16xf32>
    %47 = arith.subf %43, %46 : vector<4x16x16xf32>
    %48 = math.exp %47 : vector<4x16x16xf32>
    %cst_10 = arith.constant dense<0.000000e+00> : vector<4x16xf32>
    %49 = vector.multi_reduction <add>, %48, %cst_10 [2] : vector<4x16x16xf32> to vector<4x16xf32>
    %50 = vector.shape_cast %49 : vector<4x16xf32> to vector<4x16x1xf32>
    %51 = vector.broadcast %50 : vector<4x16x1xf32> to vector<4x16x16xf32>
    %52 = arith.divf %48, %51 : vector<4x16x16xf32>
    %53 = arith.truncf %52 : vector<4x16x16xf32> to vector<4x16x16xbf16>
    "tpu.trace_start"() <{level = 10 : i32, message = "hqk,hkd->hqd"}> : () -> ()
    %cst_11 = arith.constant dense<0.000000e+00> : vector<4x16x8xf32>
    %54 = tpu.matmul %53, %38, %cst_11 {dimension_numbers = #tpu.dot_dimension_numbers<[2], [1], [1], [2], [0, 0, 0, 1, 1, 2], [0], [0]>} : vector<4x16x16xbf16>, vector<4x16x8xbf16>, vector<4x16x8xf32> -> vector<4x16x8xf32>
    "tpu.trace_stop"() : () -> ()
    %55 = vector.extract_strided_slice %54 {offsets = [0, 0, 0], sizes = [1, 16, 8], strides = [1, 1, 1]} : vector<4x16x8xf32> to vector<1x16x8xf32>
    %56 = vector.shape_cast %55 : vector<1x16x8xf32> to vector<16x8xf32>
    %57 = vector.extract_strided_slice %54 {offsets = [1, 0, 0], sizes = [1, 16, 8], strides = [1, 1, 1]} : vector<4x16x8xf32> to vector<1x16x8xf32>
    %58 = vector.shape_cast %57 : vector<1x16x8xf32> to vector<16x8xf32>
    %59 = vector.extract_strided_slice %54 {offsets = [2, 0, 0], sizes = [1, 16, 8], strides = [1, 1, 1]} : vector<4x16x8xf32> to vector<1x16x8xf32>
    %60 = vector.shape_cast %59 : vector<1x16x8xf32> to vector<16x8xf32>
    %61 = vector.extract_strided_slice %54 {offsets = [3, 0, 0], sizes = [1, 16, 8], strides = [1, 1, 1]} : vector<4x16x8xf32> to vector<1x16x8xf32>
    %62 = vector.shape_cast %61 : vector<1x16x8xf32> to vector<16x8xf32>
    %63 = tpu.concatenate %56, %58, %60, %62 in 1 : vector<16x8xf32>, vector<16x8xf32>, vector<16x8xf32>, vector<16x8xf32> -> vector<16x32xf32>
    %c0_12 = arith.constant 0 : index
    %c0_13 = arith.constant 0 : index
    %64 = vector.load %arg5[%c0_12, %c0_13] : memref<16x32xf32, #tpu.memory_space<vmem>>, vector<16x32xf32>
    tpu.vector_store %arg5[%c0_12, %c0_13], %63 {strides = array<i32>} : memref<16x32xf32, #tpu.memory_space<vmem>>, vector<16x32xf32>,
    return
  }
  func.func @transform_0(%arg0: i32) -> (i32, i32) {
    %c0_i32 = arith.constant 0 : i32
    %c0_i32_0 = arith.constant 0 : i32
    %c0_i32_1 = arith.constant 0 : i32
    return %c0_i32, %c0_i32_0 : i32, i32
  }
  func.func @transform_1(%arg0: i32) -> (i32, i32) {
    %c0_i32 = arith.constant 0 : i32
    %c0_i32_0 = arith.constant 0 : i32
    %c0_i32_1 = arith.constant 0 : i32
    return %c0_i32, %c0_i32_0 : i32, i32
  }
  func.func @transform_2(%arg0: i32) -> (i32, i32) {
    %c0_i32 = arith.constant 0 : i32
    %c0_i32_0 = arith.constant 0 : i32
    %c0_i32_1 = arith.constant 0 : i32
    return %c0_i32, %c0_i32_0 : i32, i32
  }
  func.func @transform_3(%arg0: i32) -> (i32, i32) {
    %c0_i32 = arith.constant 0 : i32
    %c0_i32_0 = arith.constant 0 : i32
    %c0_i32_1 = arith.constant 0 : i32
    return %c0_i32, %c0_i32_0 : i32, i32
  }
  func.func @transform_4(%arg0: i32) -> (i32, i32) {
    %c0_i32 = arith.constant 0 : i32
    %c0_i32_0 = arith.constant 0 : i32
    %c0_i32_1 = arith.constant 0 : i32
    return %c0_i32, %c0_i32_0 : i32, i32
  }
}

</mosaic_0001>

<bundles_post_ra>
// kernel: tpu_custom_call.1
= control target key start
LH: loop header
LB: loop body
LE: loop exit
PB: predicated region body
PF: predicated region fallthrough
CT: control target
= control target key end

     0   :  { %9 = vsyncpa [#allocation3], 0  ;;  %s1311_s0 = inlined_call_operand.hbm [shape: bf16[16,32], index: 0, kind: input, shape index: {}]   ;;  %s1312_s1 = inlined_call_operand.hbm [shape: f32[16,16], index: 1, kind: input, shape index: {}]   ;;  %s1313_s2 = inlined_call_operand.hbm [shape: bf16[32,96], index: 2, kind: input, shape index: {}]   ;;  %s1314_s3 = inlined_call_operand.vmem [shape: f32[1,96], index: 3, kind: input, shape index: {}]   ;;  %s1315_s4 = inlined_call_operand.hbm [shape: f32[16,32], index: 4, kind: output, shape index: {}]  }
   0x1   :  { %10 = vsyncpa [#allocation6], 0 }
   0x2   :  { %11 = vsyncpa [#allocation4], 0  ;;  %s1111_s15 = smov [#allocation5]  }
   0x3   :  { %s29_s16 = sshll.u32 %s1111_s15, 4  ;;  %s30_s16 = int_to_ptr.vmem [resolvable:$true] %s29_s16 }
   0x4   :  { %s1033_s17 = scalar_lea.vmem %s30_s16, 256  ;;  %p1038_p1 = scmp.lt.s32.totalorder %s30_s16, %s30_s16 }
   0x5   :  { %p1034_p0 = scmp.ne.s32.totalorder %s30_s16, %s1033_s17  ;;  %p1039_p2 = scmp.lt.s32.totalorder %s1033_s17, %s1033_s17 }
   0x7   :  { %p1040_p3 = por %p1039_p2, %p1038_p1 }
   0x9   :  { %p1041_p4 = pnand %p1040_p3, %p1034_p0 }
   0xb   :  { %1044 = shalt.err (!%p1041_p4)
}
   0xc   :  { %s1112_s18 = smov 128   ;;  %s1113_s19 = smov 8  }
   0xd   :  { %35 = dma.hbm_to_vmem [thread:$0]  %s1312_s1, 256, %s30_s16, [#allocation6], %s1112_s18, %s1112_s18, %s1113_s19  }
   0xe   :  { %s1114_s22 = smov [#allocation2]  }
   0xf   :  { %s17_s23 = sshll.u32 %s1114_s22, 4  ;;  %s18_s23 = int_to_ptr.vmem [resolvable:$true] %s17_s23 }
  0x10   :  { %s1053_s24 = scalar_lea.vmem %s18_s23, 128  ;;  %p1058_p6 = scmp.lt.s32.totalorder %s18_s23, %s18_s23 }
  0x11   :  { %p1054_p5 = scmp.ne.s32.totalorder %s18_s23, %s1053_s24  ;;  %p1059_p7 = scmp.lt.s32.totalorder %s1053_s24, %s1053_s24 }
  0x13   :  { %p1060_p8 = por %p1059_p7, %p1058_p6 }
  0x15   :  { %p1061_p9 = pnand %p1060_p8, %p1054_p5 }
  0x17   :  { %1064 = shalt.err (!%p1061_p9)
}
  0x18   :  { %s1115_s25 = smov 64   ;;  %s1116_s26 = smov 4  }
  0x19   :  { %23 = dma.hbm_to_vmem [thread:$0]  %s1311_s0, 128, %s18_s23, [#allocation3], %s1115_s25, %s1115_s25, %s1116_s26  }
  0x1a   :  { %s1117_s29 = smov [#allocation7]  }
  0x1b   :  { %s41_s1 = sshll.u32 %s1117_s29, 4  ;;  %s42_s1 = int_to_ptr.vmem [resolvable:$true] %s41_s1 }
  0x1c   :  { %s1073_s30 = scalar_lea.vmem %s42_s1, 256  ;;  %p1078_p11 = scmp.lt.s32.totalorder %s42_s1, %s42_s1 }
  0x1d   :  { %p1074_p10 = scmp.ne.s32.totalorder %s42_s1, %s1073_s30  ;;  %p1079_p12 = scmp.lt.s32.totalorder %s1073_s30, %s1073_s30 }
  0x1f   :  { %p1080_p13 = por %p1079_p12, %p1078_p11 }
  0x21   :  { %p1081_p0 = pnand %p1080_p13, %p1074_p10 }
  0x23   :  { %1084 = shalt.err (!%p1081_p0)
}
  0x24   :  { %47 = dma.hbm_to_vmem [thread:$0]  %s1313_s2, 256, %s42_s1, [#allocation6], %s1115_s25, %s1115_s25, %s1116_s26  }
  0x25   :  { %1105 = dma.done.wait [#allocation3], 128  }
  0x26   :  { %1106 = vsyncadd [#allocation3], 4294967168 }
  0x27   :  { %1107 = dma.done.wait [#allocation6], 512  }
  0x28   :  { %1108 = vsyncadd [#allocation6], 4294966784  ;;  %v1118_v0 = vmov 0.0   ;;  %vm1119_vm0 = vmmov 0   ;;  %v990_v1 = vld [vmem:[#allocation7 + $0x8] sm:$0xff]   ;;  %v991_v2 = vld [vmem:[#allocation7] sm:$0xff]  }
  0x29   :  { %914 = vmatprep.subr.bf16.mxu0 %v1118_v0  ;;  %918 = vmatprep.mubr.msk.bf16.mxu0 %vm1119_vm0, %v1118_v0  ;;  %v992_v3 = vld [vmem:[#allocation2] sm:$0xff]   ;;  %vm90_vm1 = vcmask 261120   ;;  %vm181_vm2 = vcmask 64512   ;;  %s1120_s7 = smov 112   ;;  %s1121_s8 = smov 120   ;;  %v176_v36 = vld [vmem:[#allocation5 + $0x8] sm:$0xff] }
  0x2a   :  { %915 = vmatpush3.bf16.msra.mxu0 %v990_v1  ;;  %v862_v4 = vld [vmem:[%s1314_s3] ss:$0 sm:$0xff]  ;;  %s1122_s3 = smov 104   ;;  %s1123_s9 = smov 96   ;;  %v175_v38 = vld [vmem:[#allocation5] sm:$0xff]  ;;  %vm526_vm3 = vcmask 130048  }
  0x2b   :  { %916 = vmatprep.subr.bf16.mxu0 %v1118_v0  ;;  %s1124_s10 = smov 16   ;;  %s1125_s11 = smov 24   ;;  %vm839_vm4 = vcmask 195584  }
  0x2c   :  { %s1126_s12 = smov [#allocation8]  }
  0x2d   :  { %s849_s13 = sshll.u32 %s1126_s12, 4  ;;  %s850_s13 = int_to_ptr.vmem [resolvable:$true] %s849_s13 }
  0x2e   :  { %917 = vmatpush3.bf16.msra.mxu0 %v991_v2  ;;  %s1085_s14 = scalar_lea.vmem %s850_s13, 256  ;;  %p1090_p2 = scmp.lt.s32.totalorder %s850_s13, %s850_s13 }
  0x2f   :  { %p1086_p1 = scmp.ne.s32.totalorder %s850_s13, %s1085_s14  ;;  %p1091_p3 = scmp.lt.s32.totalorder %s1085_s14, %s1085_s14 }
  0x31   :  { %919 = vmatmul.mubr.msk.bf16.vlgmr.msra.gmra.mxu0 %vm90_vm1, %v992_v3  ;;  %p1092_p4 = por %p1091_p3, %p1090_p2 }
  0x33   :  { %p1093_p5 = pnand %p1092_p4, %p1086_p1 }
  0xf1   :  { %v128_v5 = vpop.f32.mrf.mxu0 }
  0xf2   :  { %v1176_v6 = vadd.f32 %v862_v4, %v128_v5 }
  0xf3   :  { %v920_v7 = vpop.f32.mrf.mxu0 }
  0xf4   :  { %v135_v8 = vmul.f32 0.35355338, %v1176_v6 }
  0xf5   :  { %v131_v9 = vpop.f32.mrf.mxu0 }
  0xf6   :  { %v1179_v10 = vadd.f32 %v862_v4, %v131_v9  ;;  %926 = vmatprep.mubr.msk.f32.mxu1 %vm181_vm2, %v135_v8 }
  0xf7   :  { %v921_v11 = vpop.f32.mrf.mxu0 }
  0xf8   :  { %159 = vrot.lane.b32.xlu1 %v1179_v10, %s1120_s7  ;;  %155 = vrot.lane.b32.xlu0 %v1179_v10, %s1121_s8  ;;  %v171_v12 = vpack.c.bf16 %v1179_v10, %v1176_v6  ;;  %v136_v13 = vmul.f32 0.35355338, %v1179_v10 }
  0xfc   :  { %163 = vrot.lane.b32.xlu1 %v1179_v10, %s1122_s3  ;;  %153 = vrot.lane.b32.xlu0 %v1176_v6, %s1121_s8 }
 0x100   :  { %161 = vrot.lane.b32.xlu1 %v1176_v6, %s1122_s3  ;;  %157 = vrot.lane.b32.xlu0 %v1176_v6, %s1120_s7 }
 0x104   :  { %177 = vrot.lane.b32.xlu0 %v1176_v6, %s1123_s9 }
 0x108   :  { %139 = vrot.lane.b32.xlu0 %v135_v8, %s1121_s8 }
 0x10c   :  { %179 = vrot.lane.b32.xlu0 %v1179_v10, %s1123_s9 }
 0x110   :  { %143 = vrot.lane.b32.xlu0 %v135_v8, %s1120_s7 }
 0x114   :  { %141 = vrot.lane.b32.xlu0 %v136_v13, %s1121_s8 }
 0x16a   :  { %v1198_v14 = vpop.permute.xlu1 %159  ;;  %v1200_v15 = vpop.permute.xlu0 %155 }
 0x16e   :  { %v1202_v16 = vpop.permute.xlu1 %163  ;;  %v1204_v17 = vpop.permute.xlu0 %153 }
 0x16f   :  { %265 = vrot.lane.b32.xlu1 %v1204_v17, %s1123_s9  ;;  %v172_v18 = vpack.c.bf16 %v1200_v15, %v1204_v17 }
 0x172   :  { %v1209_v19 = vpop.permute.xlu1 %161  ;;  %v1211_v20 = vpop.permute.xlu0 %157 }
 0x173   :  { %439 = vrot.lane.b32.xlu1 %v1209_v19, %s1123_s9  ;;  %352 = vrot.lane.b32.xlu0 %v1211_v20, %s1123_s9  ;;  %v173_v21 = vpack.c.bf16 %v1198_v14, %v1211_v20 }
 0x176   :  { %v178_v22 = vpop.permute.xlu0 %177 }
 0x177   :  { %267 = vrot.lane.b32.xlu1 %v1200_v15, %s1123_s9  ;;  %147 = vrot.lane.b32.xlu0 %v135_v8, %s1122_s3  ;;  %v174_v15 = vpack.c.bf16 %v1202_v16, %v1209_v19 }
 0x17a   :  { %v140_v23 = vpop.permute.xlu0 %139 }
 0x17b   :  { %354 = vrot.lane.b32.xlu1 %v1198_v14, %s1123_s9  ;;  %933 = vmatprep.mubr.msk.f32.mxu0 %vm181_vm2, %v140_v23 }
 0x17e   :  { %v180_v24 = vpop.permute.xlu0 %179 }
 0x17f   :  { %441 = vrot.lane.b32.xlu1 %v1202_v16, %s1123_s9  ;;  %922 = vmatprep.subr.msk.mxu1 %vm181_vm2, %v180_v24 }
 0x180   :  { %923 = vmatpush3.xpose.msk.msra.mxu1 %vm181_vm2, %v180_v24 }
 0x181   :  { %924 = vmatprep.subr.msk.mxu1 %vm181_vm2, %v178_v22 }
 0x182   :  { %v144_v25 = vpop.permute.xlu0 %143 }
 0x183   :  { %145 = vrot.lane.b32.xlu1 %v136_v13, %s1120_s7 }
 0x184   :  { %925 = vmatpush3.xpose.msk.msra.mxu1 %vm181_vm2, %v178_v22 }
 0x186   :  { %v142_v28 = vpop.permute.xlu0 %141 }
 0x187   :  { %149 = vrot.lane.b32.xlu1 %v136_v13, %s1122_s3  ;;  %927 = vmatmul.mubr.msk.f32.vlgmr.msra.gmra.mxu1 %vm181_vm2, %v136_v13 }
 0x188   :  { %940 = vmatprep.mubr.msk.f32.mxu1 %vm181_vm2, %v144_v25 }
 0x1e1   :  { %v266_v26 = vpop.permute.xlu1 %265 }
 0x1e5   :  { %v440_v27 = vpop.permute.xlu1 %439  ;;  %v353_v30 = vpop.permute.xlu0 %352 }
 0x1e9   :  { %v268_v29 = vpop.permute.xlu1 %267  ;;  %v148_v33 = vpop.permute.xlu0 %147 }
 0x1ea   :  { %929 = vmatprep.subr.msk.mxu0 %vm181_vm2, %v268_v29 }
 0x1eb   :  { %930 = vmatpush3.xpose.msk.msra.mxu0 %vm181_vm2, %v268_v29 }
 0x1ec   :  { %931 = vmatprep.subr.msk.mxu0 %vm181_vm2, %v266_v26 }
 0x1ed   :  { %v355_v31 = vpop.permute.xlu1 %354 }
 0x1ee   :  { %936 = vmatprep.subr.msk.mxu1 %vm181_vm2, %v355_v31 }
 0x1ef   :  { %932 = vmatpush3.xpose.msk.msra.mxu0 %vm181_vm2, %v266_v26  ;;  %937 = vmatpush3.xpose.msk.msra.mxu1 %vm181_vm2, %v355_v31 }
 0x1f0   :  { %938 = vmatprep.subr.msk.mxu1 %vm181_vm2, %v353_v30 }
 0x1f1   :  { %v442_v32 = vpop.permute.xlu1 %441 }
 0x1f2   :  { %934 = vmatmul.mubr.msk.f32.vlgmr.msra.gmra.mxu0 %vm181_vm2, %v142_v28  ;;  %943 = vmatprep.subr.msk.mxu0 %vm181_vm2, %v442_v32 }
 0x1f3   :  { %939 = vmatpush3.xpose.msk.msra.mxu1 %vm181_vm2, %v353_v30  ;;  %944 = vmatpush3.xpose.msk.msra.mxu0 %vm181_vm2, %v442_v32 }
 0x1f4   :  { %947 = vmatprep.mubr.msk.f32.mxu0 %vm181_vm2, %v148_v33  ;;  %945 = vmatprep.subr.msk.mxu0 %vm181_vm2, %v440_v27 }
 0x1f5   :  { %v146_v34 = vpop.permute.xlu1 %145  ;;  %950 = vmatprep.subr.bf16.mxu1 %v1118_v0 }
 0x1f6   :  { %941 = vmatmul.mubr.msk.f32.vlgmr.msra.gmra.mxu1 %vm181_vm2, %v146_v34 }
 0x1f7   :  { %946 = vmatpush3.xpose.msk.msra.mxu0 %vm181_vm2, %v440_v27  ;;  %952 = vmatprep.mubr.msk.bf16.mxu1 %vm1119_vm0, %v1118_v0 }
 0x1f8   :  { %956 = vmatprep.subr.bf16.mxu0 %v1118_v0 }
 0x1f9   :  { %v150_v35 = vpop.permute.xlu1 %149 }
 0x1fa   :  { %948 = vmatmul.mubr.msk.f32.vlgmr.msra.gmra.mxu0 %vm181_vm2, %v150_v35 }
 0x1fb   :  { %958 = vmatprep.mubr.msk.bf16.mxu0 %vm1119_vm0, %v1118_v0 }
 0x247   :  { %v928_v37 = vpop.f32.mrf.mxu1 }
 0x248   :  { %v262_v39 = vadd.f32 %v928_v37, %v176_v36 }
 0x249   :  { %v256_v40 = vpop.f32.mrf.mxu1 }
 0x24a   :  { %v257_v41 = vadd.f32 %v256_v40, %v175_v38  ;;  %v530_v42 = vsel %vm526_vm3, %v262_v39, -inf }
 0x24b   :  { %531 = vmax.xlane.f32.xlu1 %v530_v42 }
 0x24c   :  { %v527_v43 = vsel %vm526_vm3, %v257_v41, -inf }
 0x24d   :  { %528 = vmax.xlane.f32.xlu0 %v527_v43 }
 0x2b2   :  { %v935_v44 = vpop.f32.mrf.mxu0 }
 0x2b3   :  { %v349_v45 = vadd.f32 %v935_v44, %v176_v36 }
 0x2b4   :  { %v343_v46 = vpop.f32.mrf.mxu0 }
 0x2b5   :  { %v344_v47 = vadd.f32 %v343_v46, %v175_v38  ;;  %v536_v48 = vsel %vm526_vm3, %v349_v45, -inf }
 0x2b6   :  { %v942_v49 = vpop.f32.mrf.mxu1  ;;  %537 = vmax.xlane.f32.xlu0 %v536_v48 }
 0x2b7   :  { %v436_v51 = vadd.f32 %v942_v49, %v176_v36  ;;  %v533_v53 = vsel %vm526_vm3, %v344_v47, -inf }
 0x2b8   :  { %v430_v50 = vpop.f32.mrf.mxu1 }
 0x2b9   :  { %v431_v52 = vadd.f32 %v430_v50, %v175_v38  ;;  %v542_v59 = vsel %vm526_vm3, %v436_v51, -inf }
 0x2ba   :  { %v949_v54 = vpop.f32.mrf.mxu0  ;;  %534 = vmax.xlane.f32.xlu0 %v533_v53 }
 0x2bb   :  { %v539_v55 = vsel %vm526_vm3, %v431_v52, -inf  ;;  %v523_v57 = vadd.f32 %v949_v54, %v176_v36 }
 0x2bc   :  { %540 = vmax.xlane.f32.xlu1 %v539_v55  ;;  %v517_v56 = vpop.f32.mrf.mxu0 }
 0x2bd   :  { %v1257_v58 = vadd.f32 %v517_v56, %v175_v38  ;;  %v548_v61 = vsel %vm526_vm3, %v523_v57, -inf }
 0x2be   :  { %543 = vmax.xlane.f32.xlu0 %v542_v59 }
 0x2bf   :  { %v545_v60 = vsel %vm526_vm3, %v1257_v58, -inf }
 0x2c0   :  { %546 = vmax.xlane.f32.xlu1 %v545_v60 }
 0x2c2   :  { %549 = vmax.xlane.f32.xlu0 %v548_v61 }
 0x2d1   :  { %620 = vrot.lane.b32.xlu1 %v171_v12, %s1115_s25 }
 0x2d4   :  { %v532_v62 = vpop.xlane.xlu1 %531 }
 0x2d5   :  { %v552_v63 = vsub.f32 %v262_v39, %v532_v62 }
 0x2d6   :  { %v529_v2 = vpop.xlane.xlu0 %528 }
 0x2d7   :  { %v561_v1 = vmul.f32 1.442695, %v552_v63  ;;  %v551_v3 = vsub.f32 %v257_v41, %v529_v2 }
 0x2d9   :  { %993 = vpow2.f32 %v561_v1  ;;  %v559_v4 = vmul.f32 1.442695, %v551_v3 }
 0x2db   :  { %995 = vpow2.f32 %v559_v4 }
 0x2e6   :  { %v994_v5 = vpop.eup %993 }
 0x2e7   :  { %v578_v7 = vsel %vm526_vm3, %v994_v5, 0.0 }
 0x2e8   :  { %579 = vadd.xlane.f32.xlu0 %v578_v7  ;;  %v996_v8 = vpop.eup %995 }
 0x2e9   :  { %v575_v9 = vsel %vm526_vm3, %v996_v8, 0.0 }
 0x2f5   :  { %576 = vadd.xlane.f32.xlu1 %v575_v9 }
 0x33f   :  { %v538_v11 = vpop.xlane.xlu0 %537 }
 0x340   :  { %v554_v13 = vsub.f32 %v349_v45, %v538_v11 }
 0x342   :  { %v565_v6 = vmul.f32 1.442695, %v554_v13 }
 0x343   :  { %v535_v10 = vpop.xlane.xlu0 %534 }
 0x344   :  { %997 = vpow2.f32 %v565_v6  ;;  %v553_v12 = vsub.f32 %v344_v47, %v535_v10 }
 0x345   :  { %v541_v22 = vpop.xlane.xlu1 %540 }
 0x346   :  { %v563_v23 = vmul.f32 1.442695, %v553_v12  ;;  %v555_v24 = vsub.f32 %v431_v52, %v541_v22 }
 0x347   :  { %v544_v25 = vpop.xlane.xlu0 %543 }
 0x348   :  { %999 = vpow2.f32 %v563_v23  ;;  %v567_v26 = vmul.f32 1.442695, %v555_v24  ;;  %v556_v27 = vsub.f32 %v436_v51, %v544_v25 }
 0x349   :  { %v547_v28 = vpop.xlane.xlu1 %546 }
 0x34a   :  { %1001 = vpow2.f32 %v567_v26  ;;  %v569_v29 = vmul.f32 1.442695, %v556_v27  ;;  %v557_v44 = vsub.f32 %v1257_v58, %v547_v28 }
 0x34b   :  { %v550_v30 = vpop.xlane.xlu0 %549 }
 0x34c   :  { %1003 = vpow2.f32 %v569_v29  ;;  %v558_v31 = vsub.f32 %v523_v57, %v550_v30  ;;  %v571_v45 = vmul.f32 1.442695, %v557_v44 }
 0x34d   :  { %v621_v32 = vpop.permute.xlu1 %620 }
 0x34e   :  { %v573_v33 = vmul.f32 1.442695, %v558_v31  ;;  %951 = vmatpush3.bf16.msra.mxu1 %v621_v32 }
 0x34f   :  { %962 = vmatprep.subr.bf16.mxu1 %v1118_v0 }
 0x350   :  { %1005 = vpow2.f32 %v573_v33 }
 0x351   :  { %v998_v34 = vpop.eup %997 }
 0x352   :  { %v584_v35 = vsel %vm526_vm3, %v998_v34, 0.0 }
 0x353   :  { %585 = vadd.xlane.f32.xlu0 %v584_v35 }
 0x355   :  { %v1000_v36 = vpop.eup %999 }
 0x356   :  { %v581_v37 = vsel %vm526_vm3, %v1000_v36, 0.0 }
 0x357   :  { %v1002_v38 = vpop.eup %1001  ;;  %582 = vadd.xlane.f32.xlu1 %v581_v37 }
 0x358   :  { %v587_v40 = vsel %vm526_vm3, %v1002_v38, 0.0 }
 0x359   :  { %v1004_v39 = vpop.eup %1003 }
 0x35a   :  { %v590_v41 = vsel %vm526_vm3, %v1004_v39, 0.0 }
 0x35b   :  { %588 = vadd.xlane.f32.xlu1 %v587_v40  ;;  %591 = vadd.xlane.f32.xlu0 %v590_v41 }
 0x35d   :  { %v1006_v42 = vpop.eup %1005 }
 0x35e   :  { %v596_v43 = vsel %vm526_vm3, %v1006_v42, 0.0 }
 0x35f   :  { %597 = vadd.xlane.f32.xlu0 %v596_v43 }
 0x36c   :  { %716 = vrot.lane.b32.xlu1 %v173_v21, %s1115_s25 }
 0x371   :  { %v580_v46 = vpop.xlane.xlu0 %579 }
 0x372   :  { %1007 = vrcp.f32 %v580_v46 }
 0x373   :  { %1009 = vpow2.f32 %v571_v45 }
 0x375   :  { %668 = vrot.lane.b32.xlu0 %v172_v18, %s1115_s25 }
 0x37e   :  { %v577_v47 = vpop.xlane.xlu1 %576 }
 0x37f   :  { %1011 = vrcp.f32 %v577_v47  ;;  %v1008_v48 = vpop.eup %1007 }
 0x380   :  { %v1010_v49 = vpop.eup %1009  ;;  %v602_v52 = vmul.f32 %v1008_v48, %v994_v5 }
 0x381   :  { %v593_v14 = vsel %vm526_vm3, %v1010_v49, 0.0 }
 0x38c   :  { %v1012_v50 = vpop.eup %1011 }
 0x38d   :  { %v600_v51 = vmul.f32 %v1012_v50, %v996_v8 }
 0x38f   :  { %v615_v20 = vpack.c.bf16 %v602_v52, %v600_v51 }
 0x390   :  { %594 = vadd.xlane.f32.xlu1 %v593_v14 }
 0x391   :  { %953 = vmatmul.mubr.msk.bf16.vlgmr.msra.gmra.mxu1 %vm526_vm3, %v615_v20 }
 0x392   :  { %964 = vmatprep.mubr.msk.bf16.mxu1 %vm1119_vm0, %v1118_v0 }
 0x3a1   :  { %764 = vrot.lane.b32.xlu1 %v174_v15, %s1115_s25 }
 0x3dc   :  { %v586_v17 = vpop.xlane.xlu0 %585 }
 0x3dd   :  { %1013 = vrcp.f32 %v586_v17 }
 0x3e0   :  { %v583_v18 = vpop.xlane.xlu1 %582 }
 0x3e1   :  { %1015 = vrcp.f32 %v583_v18 }
 0x3e4   :  { %v589_v21 = vpop.xlane.xlu1 %588  ;;  %v592_v53 = vpop.xlane.xlu0 %591 }
 0x3e5   :  { %1017 = vrcp.f32 %v589_v21 }
 0x3e6   :  { %1019 = vrcp.f32 %v592_v53 }
 0x3e8   :  { %v717_v54 = vpop.permute.xlu1 %716  ;;  %v598_v55 = vpop.xlane.xlu0 %597 }
 0x3e9   :  { %963 = vmatpush3.bf16.msra.mxu1 %v717_v54  ;;  %1021 = vrcp.f32 %v598_v55 }
 0x3ea   :  { %v1014_v56 = vpop.eup %1013 }
 0x3eb   :  { %v606_v19 = vmul.f32 %v1014_v56, %v998_v34 }
 0x3ec   :  { %v669_v57 = vpop.permute.xlu0 %668 }
 0x3ed   :  { %957 = vmatpush3.bf16.msra.mxu0 %v669_v57 }
 0x3ee   :  { %v1016_v58 = vpop.eup %1015  ;;  %968 = vmatprep.subr.bf16.mxu0 %v1118_v0 }
 0x3ef   :  { %v604_v16 = vmul.f32 %v1016_v58, %v1000_v36 }
 0x3f1   :  { %v616_v59 = vpack.c.bf16 %v606_v19, %v604_v16 }
 0x3f2   :  { %v1018_v60 = vpop.eup %1017 }
 0x3f3   :  { %v1020_v61 = vpop.eup %1019  ;;  %959 = vmatmul.mubr.msk.bf16.vlgmr.msra.gmra.mxu0 %vm526_vm3, %v616_v59  ;;  %v608_v62 = vmul.f32 %v1018_v60, %v1002_v38 }
 0x3f4   :  { %v610_v63 = vmul.f32 %v1020_v61, %v1004_v39  ;;  %970 = vmatprep.mubr.msk.bf16.mxu0 %vm1119_vm0, %v1118_v0 }
 0x3f6   :  { %v617_v1 = vpack.c.bf16 %v610_v63, %v608_v62  ;;  %v1022_v4 = vpop.eup %1021 }
 0x3f7   :  { %v614_v8 = vmul.f32 %v1022_v4, %v1006_v42 }
 0x3f8   :  { %965 = vmatmul.mubr.msk.bf16.vlgmr.msra.gmra.mxu1 %vm526_vm3, %v617_v1 }
 0x419   :  { %v595_v2 = vpop.xlane.xlu1 %594 }
 0x41a   :  { %1023 = vrcp.f32 %v595_v2 }
 0x41d   :  { %v765_v3 = vpop.permute.xlu1 %764 }
 0x41e   :  { %969 = vmatpush3.bf16.msra.mxu0 %v765_v3 }
 0x427   :  { %v1024_v5 = vpop.eup %1023 }
 0x428   :  { %v612_v7 = vmul.f32 %v1024_v5, %v1010_v49 }
 0x42a   :  { %v618_v9 = vpack.c.bf16 %v614_v8, %v612_v7 }
 0x42c   :  { %971 = vmatmul.mubr.msk.bf16.vlgmr.msra.gmra.mxu0 %vm526_vm3, %v618_v9 }
 0x451   :  { %v660_v11 = vpop.f32.mrf.mxu1 }
 0x453   :  { %v954_v13 = vpop.f32.mrf.mxu1 }
 0x455   :  { %v663_v6 = vpop.f32.mrf.mxu1 }
 0x457   :  { %v955_v10 = vpop.f32.mrf.mxu1 }
 0x4b3   :  { %v708_v0 = vpop.f32.mrf.mxu0 }
 0x4b4   :  { %813 = vrot.lane.b32.xlu0 %v708_v0, %s1113_s19 }
 0x4b5   :  { %v960_v12 = vpop.f32.mrf.mxu0 }
 0x4b7   :  { %v711_v22 = vpop.f32.mrf.mxu0 }
 0x4b8   :  { %v756_v23 = vpop.f32.mrf.mxu1  ;;  %815 = vrot.lane.b32.xlu1 %v711_v22, %s1113_s19 }
 0x4b9   :  { %821 = vrot.lane.b32.xlu0 %v756_v23, %s1124_s10  ;;  %v961_v24 = vpop.f32.mrf.mxu0 }
 0x4ba   :  { %v966_v25 = vpop.f32.mrf.mxu1 }
 0x4bc   :  { %v759_v26 = vpop.f32.mrf.mxu1 }
 0x4bd   :  { %823 = vrot.lane.b32.xlu1 %v759_v26, %s1124_s10 }
 0x4be   :  { %v967_v27 = vpop.f32.mrf.mxu1 }
 0x4ec   :  { %v804_v28 = vpop.f32.mrf.mxu0 }
 0x4ed   :  { %829 = vrot.lane.b32.xlu0 %v804_v28, %s1125_s11 }
 0x4ee   :  { %v972_v29 = vpop.f32.mrf.mxu0 }
 0x4f0   :  { %v807_v30 = vpop.f32.mrf.mxu0 }
 0x4f1   :  { %831 = vrot.lane.b32.xlu1 %v807_v30, %s1125_s11 }
 0x4f2   :  { %v973_v31 = vpop.f32.mrf.mxu0 }
 0x526   :  { %v814_v32 = vpop.permute.xlu0 %813 }
 0x527   :  { %v835_v35 = vsel %vm181_vm2, %v660_v11, %v814_v32 }
 0x52a   :  { %v816_v33 = vpop.permute.xlu1 %815 }
 0x52b   :  { %v822_v34 = vpop.permute.xlu0 %821  ;;  %v836_v40 = vsel %vm181_vm2, %v663_v6, %v816_v33 }
 0x52c   :  { %v837_v36 = vsel %vm526_vm3, %v835_v35, %v822_v34 }
 0x52f   :  { %v824_v37 = vpop.permute.xlu1 %823 }
 0x530   :  { %v838_v41 = vsel %vm526_vm3, %v836_v40, %v824_v37 }
 0x55f   :  { %v830_v38 = vpop.permute.xlu0 %829 }
 0x560   :  { %v840_v39 = vsel %vm839_vm4, %v837_v36, %v830_v38 }
 0x561   :  { %842 = vst.msk [vmem:[#allocation8] sm:$0xff] %vm90_vm1, %v840_v39 }
 0x563   :  { %v832_v42 = vpop.permute.xlu1 %831 }
 0x564   :  { %v841_v43 = vsel %vm839_vm4, %v838_v41, %v832_v42 }
 0x565   :  { %843 = vst.msk [vmem:[#allocation8 + $0x8] sm:$0xff] %vm90_vm1, %v841_v43 }
 0x566   :  { %1096 = shalt.err (!%p1093_p5)
}
 0x567   :  { %855 = dma.vmem_to_hbm [thread:$0]  %s850_s13, 256, %s1315_s4, [#allocation4], %s1112_s18, %s1112_s18, %s1113_s19  }
 0x568   :  { %1109 = dma.done.wait [#allocation4], 256  }
 0x569   :  { %1110 = vsyncadd [#allocation4], 4294967040 }
 0x56a   :  { %859 = vsyncpa [#allocation3], 1 }
 0x56b   :  { %860 = vsyncpa [#allocation6], 1 }
 0x56c   :  { %861 = vsyncpa [#allocation4], 1 }

</bundles_post_ra>
